<compile_context>
chip_gen: v7x
topology: tpu7x:2x2x1
jax: 0.10.0
libtpu: 0.0.40
codegen_flags: <defaults>
</compile_context>

<pallas_src>
import jax
import jax.numpy as jnp
from jax.experimental import pallas as pl
from jax.experimental.pallas import tpu as pltpu

HIDDEN = 50    # logical hidden width (matches the PyTorch module)
HPAD = 128     # lane-padded hidden width used inside the kernel


def _round_up(n, m):
    return ((n + m - 1) // m) * m


def _value_net_kernel(x_ref, w1_ref, b1_ref, w2_ref, b2_ref,
                      w3_ref, b3_ref, wv_ref, bv_ref, o_ref):
    # fc1..fc3: bf16 MXU matmuls with f32 accumulation; bias-add + tanh in f32
    # (portable to v5e, exact bias semantics).
    x = x_ref[...]                                                    # [TB, D] bf16
    h = jnp.tanh(jnp.dot(x, w1_ref[...],
                         preferred_element_type=jnp.float32) + b1_ref[...])
    h = jnp.tanh(jnp.dot(h.astype(jnp.bfloat16), w2_ref[...],
                         preferred_element_type=jnp.float32) + b2_ref[...])
    h = jnp.tanh(jnp.dot(h.astype(jnp.bfloat16), w3_ref[...],
                         preferred_element_type=jnp.float32) + b3_ref[...])
    # Value head: contract h's hidden dim against the f32 wv row. Mosaic emits a
    # lane-dense (1, TB) result directly -- no [TB] sublane vector + relayout.
    v = jnp.einsum('oh,bh->ob', wv_ref[...], h,
                   preferred_element_type=jnp.float32)                # [1, TB]
    o_ref[...] = (v + bv_ref[...]).astype(o_ref.dtype)                # [1, TB]


def pad_params(params, hpad=HPAD):
    """Zero-pad hidden dim (50 -> hpad); bf16 matmul weights, f32 biases/head.

    Padding is exact: padded output columns have zero weights/bias, so their
    activation is tanh(0)=0, and the matching input rows of the next layer are
    zero too, contributing nothing downstream.
    """
    h = params["w2"].shape[0]
    assert hpad >= h
    pc = hpad - h
    w1 = jnp.pad(params["w1"], ((0, 0), (0, pc))).astype(jnp.bfloat16)
    b1 = jnp.pad(params["b1"], ((0, 0), (0, pc)))
    w2 = jnp.pad(params["w2"], ((0, pc), (0, pc))).astype(jnp.bfloat16)
    b2 = jnp.pad(params["b2"], ((0, 0), (0, pc)))
    w3 = jnp.pad(params["w3"], ((0, pc), (0, pc))).astype(jnp.bfloat16)
    b3 = jnp.pad(params["b3"], ((0, 0), (0, pc)))
    wv = jnp.pad(params["wv"].T, ((0, 0), (0, pc)))        # [1, hpad] f32 row
    bv = params["bv"].reshape(1, 1)
    return (w1, b1, w2, b2, w3, b3, wv, bv)


def value_net_forward(x, params, *, block_b=2048):
    """x: [B, input_dim] float32 -> [B, 1] float32 (fused value-net forward)."""
    B, D = x.shape
    weights = pad_params(params)

    # Guard the lane-dense output fast path: TB must be a multiple of 128.
    block_b = _round_up(max(int(block_b), 128), 128)
    # Largest tile (<= block_b) that still gives >= 2 grid steps whenever B > 128,
    # so v7x's two TensorCores both get work; big B still uses the full block_b.
    TB = min(block_b, max(128, _round_up(-(-B // 2), 128)))
    B_pad = _round_up(B, TB)
    G = B_pad // TB

    x = x.astype(jnp.bfloat16)                      # halves x DMA bytes too
    if B_pad != B:
        x = jnp.pad(x, ((0, B_pad - B), (0, 0)))

    resident = lambda i: (0, 0)                     # weights: same block every step
    in_specs = [pl.BlockSpec((TB, D), lambda i: (i, 0))]
    in_specs += [pl.BlockSpec(w.shape, resident) for w in weights]

    weight_bytes = sum(int(w.size) * w.dtype.itemsize for w in weights)
    cost = pl.CostEstimate(
        flops=2 * B_pad * (D * HPAD + 2 * HPAD * HPAD + HPAD),
        transcendentals=3 * B_pad * HPAD,
        bytes_accessed=B_pad * D * 2 + B_pad * 4 + weight_bytes,
    )

    out = pl.pallas_call(
        _value_net_kernel,
        grid=(G,),
        in_specs=in_specs,
        out_specs=pl.BlockSpec((1, TB), lambda i: (i, 0)),
        out_shape=jax.ShapeDtypeStruct((G, TB), jnp.float32),
        compiler_params=pltpu.CompilerParams(
            dimension_semantics=("parallel",),   # shard batch tiles across TCs (v7x)
        ),
        cost_estimate=cost,
    )(x, *weights)

    return out.reshape(B_pad, 1)[:B]


def init_params(key, input_dim, hidden=HIDDEN):
    """Deterministic init mimicking PyTorch Linear's U(-1/sqrt(fan_in), +)."""
    ks = jax.random.split(key, 8)

    def linear(kw, kb, fan_in, fan_out):
        bound = 1.0 / jnp.sqrt(jnp.float32(fan_in))
        w = jax.random.uniform(kw, (fan_in, fan_out), jnp.float32, -bound, bound)
        b = jax.random.uniform(kb, (1, fan_out), jnp.float32, -bound, bound)
        return w, b

    w1, b1 = linear(ks[0], ks[1], input_dim, hidden)
    w2, b2 = linear(ks[2], ks[3], hidden, hidden)
    w3, b3 = linear(ks[4], ks[5], hidden, hidden)
    wv, bv = linear(ks[6], ks[7], hidden, 1)
    return {"w1": w1, "b1": b1, "w2": w2, "b2": b2,
            "w3": w3, "b3": b3, "wv": wv, "bv": bv}


def value_net_reference(x, p):
    h = jnp.tanh(x @ p["w1"] + p["b1"])
    h = jnp.tanh(h @ p["w2"] + p["b2"])
    h = jnp.tanh(h @ p["w3"] + p["b3"])
    return h @ p["wv"] + p["bv"]


if __name__ == "__main__":
    key = jax.random.PRNGKey(0)
    k_p, k_x1, k_x2 = jax.random.split(key, 3)

    input_dim = 32
    params = init_params(k_p, input_dim)

    # Tolerance covers the bf16 matmul path (RMS output error ~1e-3 through three
    # tanh-bounded layers); structural bugs would show up at O(1e-1).
    TOL = dict(atol=2e-2, rtol=2e-2)

    # Small batch (latency path): single grid step, batch padded to one 128-row tile.
    x_small = jax.random.normal(k_x1, (8, input_dim), jnp.float32)
    out_small = jax.block_until_ready(value_net_forward(x_small, params))
    assert out_small.shape == (8, 1)
    assert jnp.allclose(out_small, value_net_reference(x_small, params), **TOL), \
        "small-batch mismatch vs reference"

    # Larger, non-multiple-of-tile batch: exercises the >=2-step grid (TB=512, G=2),
    # the megacore-parallel axis, padding and the lane-dense output path.
    x_big = jax.random.normal(k_x2, (1000, input_dim), jnp.float32)
    out_big = jax.block_until_ready(value_net_forward(x_big, params))
    assert out_big.shape == (1000, 1)
    assert jnp.allclose(out_big, value_net_reference(x_big, params), **TOL), \
        "batched mismatch vs reference"

    print("KERNEL_OK")
</pallas_src>

<mosaic_0001>
module attributes {stable_mosaic.version = 11 : i64} {
  func.func @_value_net_kernel(%arg0: i32, %arg1: memref<128x32xbf16, #tpu.memory_space<vmem>>, %arg2: memref<32x128xbf16, #tpu.memory_space<vmem>>, %arg3: memref<1x128xf32, #tpu.memory_space<vmem>>, %arg4: memref<128x128xbf16, #tpu.memory_space<vmem>>, %arg5: memref<1x128xf32, #tpu.memory_space<vmem>>, %arg6: memref<128x128xbf16, #tpu.memory_space<vmem>>, %arg7: memref<1x128xf32, #tpu.memory_space<vmem>>, %arg8: memref<1x128xf32, #tpu.memory_space<vmem>>, %arg9: memref<1x1xf32, #tpu.memory_space<vmem>>, %arg10: memref<1x128xf32, #tpu.memory_space<vmem>>) attributes {dimension_semantics = [#tpu.dimension_semantics<parallel>], iteration_bounds = array<i64: 1>, scalar_prefetch = 0 : i64, scratch_operands = 0 : i64, tpu.core_type = #tpu.core_type<tc>, window_params = [{transform_indices = @transform_0, window_bounds = array<i64: 128, 32>}, {pipeline_mode = #tpu.pipeline_mode<synchronous>, transform_indices = @transform_1, window_bounds = array<i64: 32, 128>}, {pipeline_mode = #tpu.pipeline_mode<synchronous>, transform_indices = @transform_2, window_bounds = array<i64: 1, 128>}, {pipeline_mode = #tpu.pipeline_mode<synchronous>, transform_indices = @transform_3, window_bounds = array<i64: 128, 128>}, {pipeline_mode = #tpu.pipeline_mode<synchronous>, transform_indices = @transform_4, window_bounds = array<i64: 1, 128>}, {pipeline_mode = #tpu.pipeline_mode<synchronous>, transform_indices = @transform_5, window_bounds = array<i64: 128, 128>}, {pipeline_mode = #tpu.pipeline_mode<synchronous>, transform_indices = @transform_6, window_bounds = array<i64: 1, 128>}, {pipeline_mode = #tpu.pipeline_mode<synchronous>, transform_indices = @transform_7, window_bounds = array<i64: 1, 128>}, {pipeline_mode = #tpu.pipeline_mode<synchronous>, transform_indices = @transform_8, window_bounds = array<i64: 1, 1>}, {transform_indices = @transform_9, window_bounds = array<i64: 1, 128>}]} {
    %c0 = arith.constant 0 : index
    %c0_0 = arith.constant 0 : index
    %0 = vector.load %arg1[%c0, %c0_0] : memref<128x32xbf16, #tpu.memory_space<vmem>>, vector<128x32xbf16>
    %c0_1 = arith.constant 0 : index
    %c0_2 = arith.constant 0 : index
    %1 = vector.load %arg2[%c0_1, %c0_2] : memref<32x128xbf16, #tpu.memory_space<vmem>>, vector<32x128xbf16>
    %cst = arith.constant dense<0.000000e+00> : vector<128x128xf32>
    %2 = tpu.matmul %0, %1, %cst {dimension_numbers = #tpu.dot_dimension_numbers<[1], [0], [0], [1], [0, 0, 1, 1], [], []>} : vector<128x32xbf16>, vector<32x128xbf16>, vector<128x128xf32> -> vector<128x128xf32>
    %c0_3 = arith.constant 0 : index
    %c0_4 = arith.constant 0 : index
    %3 = vector.load %arg3[%c0_3, %c0_4] : memref<1x128xf32, #tpu.memory_space<vmem>>, vector<1x128xf32>
    %4 = vector.broadcast %3 : vector<1x128xf32> to vector<128x128xf32>
    %5 = arith.addf %2, %4 : vector<128x128xf32>
    %6 = math.tanh %5 : vector<128x128xf32>
    %7 = arith.truncf %6 : vector<128x128xf32> to vector<128x128xbf16>
    %c0_5 = arith.constant 0 : index
    %c0_6 = arith.constant 0 : index
    %8 = vector.load %arg4[%c0_5, %c0_6] : memref<128x128xbf16, #tpu.memory_space<vmem>>, vector<128x128xbf16>
    %cst_7 = arith.constant dense<0.000000e+00> : vector<128x128xf32>
    %9 = tpu.matmul %7, %8, %cst_7 {dimension_numbers = #tpu.dot_dimension_numbers<[1], [0], [0], [1], [0, 0, 1, 1], [], []>} : vector<128x128xbf16>, vector<128x128xbf16>, vector<128x128xf32> -> vector<128x128xf32>
    %c0_8 = arith.constant 0 : index
    %c0_9 = arith.constant 0 : index
    %10 = vector.load %arg5[%c0_8, %c0_9] : memref<1x128xf32, #tpu.memory_space<vmem>>, vector<1x128xf32>
    %11 = vector.broadcast %10 : vector<1x128xf32> to vector<128x128xf32>
    %12 = arith.addf %9, %11 : vector<128x128xf32>
    %13 = math.tanh %12 : vector<128x128xf32>
    %14 = arith.truncf %13 : vector<128x128xf32> to vector<128x128xbf16>
    %c0_10 = arith.constant 0 : index
    %c0_11 = arith.constant 0 : index
    %15 = vector.load %arg6[%c0_10, %c0_11] : memref<128x128xbf16, #tpu.memory_space<vmem>>, vector<128x128xbf16>
    %cst_12 = arith.constant dense<0.000000e+00> : vector<128x128xf32>
    %16 = tpu.matmul %14, %15, %cst_12 {dimension_numbers = #tpu.dot_dimension_numbers<[1], [0], [0], [1], [0, 0, 1, 1], [], []>} : vector<128x128xbf16>, vector<128x128xbf16>, vector<128x128xf32> -> vector<128x128xf32>
    %c0_13 = arith.constant 0 : index
    %c0_14 = arith.constant 0 : index
    %17 = vector.load %arg7[%c0_13, %c0_14] : memref<1x128xf32, #tpu.memory_space<vmem>>, vector<1x128xf32>
    %18 = vector.broadcast %17 : vector<1x128xf32> to vector<128x128xf32>
    %19 = arith.addf %16, %18 : vector<128x128xf32>
    %20 = math.tanh %19 : vector<128x128xf32>
    %c0_15 = arith.constant 0 : index
    %c0_16 = arith.constant 0 : index
    %21 = vector.load %arg8[%c0_15, %c0_16] : memref<1x128xf32, #tpu.memory_space<vmem>>, vector<1x128xf32>
    "tpu.trace_start"() <{level = 10 : i32, message = "oh,bh->ob"}> : () -> ()
    %cst_17 = arith.constant dense<0.000000e+00> : vector<1x128xf32>
    %22 = tpu.matmul %21, %20, %cst_17 {dimension_numbers = #tpu.dot_dimension_numbers<[1], [1], [0], [0], [0, 0, 1, 0], [], []>} : vector<1x128xf32>, vector<128x128xf32>, vector<1x128xf32> -> vector<1x128xf32>
    "tpu.trace_stop"() : () -> ()
    %c0_18 = arith.constant 0 : index
    %c0_19 = arith.constant 0 : index
    %23 = vector.load %arg9[%c0_18, %c0_19] : memref<1x1xf32, #tpu.memory_space<vmem>>, vector<1x1xf32>
    %24 = vector.broadcast %23 : vector<1x1xf32> to vector<1x128xf32>
    %25 = arith.addf %22, %24 : vector<1x128xf32>
    %c0_20 = arith.constant 0 : index
    %c0_21 = arith.constant 0 : index
    %26 = vector.load %arg10[%c0_20, %c0_21] : memref<1x128xf32, #tpu.memory_space<vmem>>, vector<1x128xf32>
    tpu.vector_store %arg10[%c0_20, %c0_21], %25 {strides = array<i32>} : memref<1x128xf32, #tpu.memory_space<vmem>>, vector<1x128xf32>,
    return
  }
  func.func @transform_0(%arg0: i32) -> (i32, i32) {
    %c0_i32 = arith.constant 0 : i32
    %c0_i32_0 = arith.constant 0 : i32
    return %arg0, %c0_i32 : i32, i32
  }
  func.func @transform_1(%arg0: i32) -> (i32, i32) {
    %c0_i32 = arith.constant 0 : i32
    %c0_i32_0 = arith.constant 0 : i32
    %c0_i32_1 = arith.constant 0 : i32
    return %c0_i32, %c0_i32_0 : i32, i32
  }
  func.func @transform_2(%arg0: i32) -> (i32, i32) {
    %c0_i32 = arith.constant 0 : i32
    %c0_i32_0 = arith.constant 0 : i32
    %c0_i32_1 = arith.constant 0 : i32
    return %c0_i32, %c0_i32_0 : i32, i32
  }
  func.func @transform_3(%arg0: i32) -> (i32, i32) {
    %c0_i32 = arith.constant 0 : i32
    %c0_i32_0 = arith.constant 0 : i32
    %c0_i32_1 = arith.constant 0 : i32
    return %c0_i32, %c0_i32_0 : i32, i32
  }
  func.func @transform_4(%arg0: i32) -> (i32, i32) {
    %c0_i32 = arith.constant 0 : i32
    %c0_i32_0 = arith.constant 0 : i32
    %c0_i32_1 = arith.constant 0 : i32
    return %c0_i32, %c0_i32_0 : i32, i32
  }
  func.func @transform_5(%arg0: i32) -> (i32, i32) {
    %c0_i32 = arith.constant 0 : i32
    %c0_i32_0 = arith.constant 0 : i32
    %c0_i32_1 = arith.constant 0 : i32
    return %c0_i32, %c0_i32_0 : i32, i32
  }
  func.func @transform_6(%arg0: i32) -> (i32, i32) {
    %c0_i32 = arith.constant 0 : i32
    %c0_i32_0 = arith.constant 0 : i32
    %c0_i32_1 = arith.constant 0 : i32
    return %c0_i32, %c0_i32_0 : i32, i32
  }
  func.func @transform_7(%arg0: i32) -> (i32, i32) {
    %c0_i32 = arith.constant 0 : i32
    %c0_i32_0 = arith.constant 0 : i32
    %c0_i32_1 = arith.constant 0 : i32
    return %c0_i32, %c0_i32_0 : i32, i32
  }
  func.func @transform_8(%arg0: i32) -> (i32, i32) {
    %c0_i32 = arith.constant 0 : i32
    %c0_i32_0 = arith.constant 0 : i32
    %c0_i32_1 = arith.constant 0 : i32
    return %c0_i32, %c0_i32_0 : i32, i32
  }
  func.func @transform_9(%arg0: i32) -> (i32, i32) {
    %c0_i32 = arith.constant 0 : i32
    %c0_i32_0 = arith.constant 0 : i32
    return %arg0, %c0_i32 : i32, i32
  }
}

</mosaic_0001>

<bundles_post_ra>
// kernel: tpu_custom_call.1
= control target key start
LH: loop header
LB: loop body
LE: loop exit
PB: predicated region body
PF: predicated region fallthrough
CT: control target
= control target key end

     0   :  { %s1333_s0 = inlined_call_operand.vmem [shape: bf16[128,32], index: 0, kind: input, shape index: {}]   ;;  %s1334_s1 = inlined_call_operand.vmem [shape: bf16[32,128], index: 1, kind: input, shape index: {}]   ;;  %s1335_s2 = inlined_call_operand.vmem [shape: f32[1,128], index: 2, kind: input, shape index: {}]   ;;  %s1336_s3 = inlined_call_operand.vmem [shape: bf16[128,128], index: 3, kind: input, shape index: {}]   ;;  %s1337_s4 = inlined_call_operand.vmem [shape: f32[1,128], index: 4, kind: input, shape index: {}]   ;;  %s1338_s5 = inlined_call_operand.hbm [shape: bf16[128,128], index: 5, kind: input, shape index: {}]   ;;  %s1339_s6 = inlined_call_operand.vmem [shape: f32[1,128], index: 6, kind: input, shape index: {}]   ;;  %s1340_s7 = inlined_call_operand.vmem [shape: f32[1,128], index: 7, kind: input, shape index: {}]   ;;  %s1341_s8 = inlined_call_operand.<no memory space> [shape: f32[1,1], index: 8, kind: input, shape index: {}]   ;;  %s1342_s9 = inlined_call_operand.hbm [shape: f32[1,128], index: 9, kind: output, shape index: {}]  }
   0x1   :  { %v14_v0 = vstv %s1341_s8 }
   0x2   :  { %15 = vst [vmem:[#allocation2] sm:$0x1] %v14_v0 }
   0x3   :  { %16 = vsyncpa [#allocation4], 0 }
   0x4   :  { %17 = vsyncpa [#allocation5], 0  ;;  %s1166_s11 = smov [#allocation3]   ;;  %s1118_s15 = scalar_lea.hbm %s1338_s5, 1024 }
   0x5   :  { %s33_s12 = sshll.u32 %s1166_s11, 4  ;;  %p1119_p0 = scmp.ne.s32.totalorder %s1338_s5, %s1118_s15  ;;  %s34_s12 = int_to_ptr.vmem [resolvable:$true] %s33_s12 }
   0x6   :  { %p1122_p1 = scmp.lt.u32.totalorder %s1118_s15, %s1338_s5 }
   0x8   :  { %p1124_p2 = pnand %p1122_p1, %p1119_p0 }
   0xa   :  { %1127 = shalt.err (!%p1124_p2)
}
   0xb   :  { %s1128_s8 = scalar_lea.vmem %s34_s12, 1024  ;;  %p1133_p4 = scmp.lt.s32.totalorder %s34_s12, %s34_s12 }
   0xc   :  { %p1129_p3 = scmp.ne.s32.totalorder %s34_s12, %s1128_s8  ;;  %p1134_p5 = scmp.lt.s32.totalorder %s1128_s8, %s1128_s8 }
   0xe   :  { %p1135_p6 = por %p1134_p5, %p1133_p4 }
  0x10   :  { %p1136_p7 = pnand %p1135_p6, %p1129_p3 }
  0x12   :  { %1139 = shalt.err (!%p1136_p7)
}
  0x13   :  { %s1167_s20 = smov 64   ;;  %s1168_s21 = smov 4  }
  0x14   :  { %39 = dma.hbm_to_vmem [thread:$0]  %s1338_s5, 1024, %s34_s12, [#allocation4], %s1167_s20, %s1167_s20, %s1168_s21  }
  0x15   :  { %1162 = dma.done.wait [#allocation4], 1024  }
  0x16   :  { %1163 = vsyncadd [#allocation4], 4294966272  ;;  %v996_v1 = vld [vmem:[%s1334_s1] sm:$0xff]   ;;  %v997_v2 = vld [vmem:[%s1334_s1 + $0x8] sm:$0xff]   ;;  %vm129_vm0 = vcmask 261120   ;;  %vm1170_vm1 = vmmov 0  }
  0x17   :  { %844 = vmatprep.subr.bf16.mxu0 %v996_v1  ;;  %v998_v3 = vld [vmem:[%s1333_s0] sm:$0xff]   ;;  %v999_v4 = vld [vmem:[%s1333_s0 + $0x8] sm:$0xff]   ;;  %v1000_v5 = vld [vmem:[%s1333_s0 + $0x10] sm:$0xff]   ;;  %s1173_s16 = smov [#allocation6]  }
  0x18   :  { %845 = vmatpush3.bf16.msra.mxu0 %v996_v1  ;;  %848 = vmatprep.mubr.msk.bf16.mxu0 %vm129_vm0, %v998_v3  ;;  %v1006_v6 = vld [vmem:[%s1336_s3] sm:$0xff]   ;;  %v1007_v7 = vld [vmem:[%s1336_s3 + $0x8] sm:$0xff]   ;;  %v1001_v8 = vld [vmem:[%s1333_s0 + $0x18] sm:$0xff]   ;;  %s739_s17 = sshll.u32 %s1173_s16, 4  ;;  %s740_s17 = int_to_ptr.vmem [resolvable:$true] %s739_s17 }
  0x19   :  { %846 = vmatprep.subr.bf16.mxu0 %v997_v2  ;;  %864 = vmatprep.subr.bf16.mxu1 %v1006_v6  ;;  %v1008_v9 = vld [vmem:[%s1336_s3 + $0x10] sm:$0xff]   ;;  %v1002_v10 = vld [vmem:[%s1333_s0 + $0x20] sm:$0xff]   ;;  %v1003_v11 = vld [vmem:[%s1333_s0 + $0x28] sm:$0xff]   ;;  %s1140_s18 = scalar_lea.vmem %s740_s17, 16  ;;  %s1144_s19 = scalar_lea.vmem %s740_s17, 32 }
  0x1a   :  { %865 = vmatpush3.bf16.msra.mxu1 %v1006_v6  ;;  %v1004_v12 = vld [vmem:[%s1333_s0 + $0x30] sm:$0xff]   ;;  %v1005_v13 = vld [vmem:[%s1333_s0 + $0x38] sm:$0xff]   ;;  %v1010_v15 = vld [vmem:[%s1336_s3 + $0x20] sm:$0xff]   ;;  %p1141_p8 = scmp.ne.s32.totalorder %s740_s17, %s1140_s18  ;;  %p1145_p9 = scmp.lt.s32.totalorder %s740_s17, %s740_s17 }
  0x1b   :  { %866 = vmatprep.subr.bf16.mxu1 %v1007_v7  ;;  %v1009_v14 = vld [vmem:[%s1336_s3 + $0x18] sm:$0xff]   ;;  %v1011_v16 = vld [vmem:[%s1336_s3 + $0x28] sm:$0xff]   ;;  %v1012_v17 = vld [vmem:[%s1336_s3 + $0x30] sm:$0xff]   ;;  %p1146_p10 = scmp.lt.s32.totalorder %s1144_s19, %s1140_s18 }
  0x1c   :  { %847 = vmatpush3.bf16.msra.mxu0 %v997_v2  ;;  %v1013_v18 = vld [vmem:[%s1336_s3 + $0x38] sm:$0xff]   ;;  %v1014_v19 = vld [vmem:[#allocation3] sm:$0xff]   ;;  %v1015_v20 = vld [vmem:[#allocation3 + $0x8] sm:$0xff]  }
  0x1d   :  { %896 = vmatprep.subr.bf16.mxu0 %v1014_v19  ;;  %v1016_v21 = vld [vmem:[#allocation3 + $0x10] sm:$0xff]   ;;  %v1017_v22 = vld [vmem:[#allocation3 + $0x18] sm:$0xff]   ;;  %p1147_p11 = por %p1146_p10, %p1145_p9 }
  0x1e   :  { %867 = vmatpush3.bf16.msra.mxu1 %v1007_v7  ;;  %v748_v23 = vld [vmem:[%s1335_s2] ss:$0 sm:$0xff] }
  0x1f   :  { %849 = vmatmul.mubr.msk.bf16.vlgmr.msra.gmra.mrb[0].mxu0 %vm129_vm0, %v999_v4  ;;  %868 = vmatprep.subr.bf16.mxu1 %v1008_v9  ;;  %p1148_p12 = pnand %p1147_p11, %p1141_p8 }
  0x20   :  { %852 = vmatprep.mubr.msk.bf16.mxu0 %vm129_vm0, %v1000_v5  ;;  %897 = vmatpush3.bf16.msra.mxu0 %v1014_v19  ;;  %v1021_v19 = vld [vmem:[#allocation3 + $0x38] sm:$0xff]  }
  0x21   :  { %898 = vmatprep.subr.bf16.mxu0 %v1015_v20 }
  0x22   :  { %869 = vmatpush3.bf16.msra.mxu1 %v1008_v9 }
  0x23   :  { %870 = vmatprep.subr.bf16.mxu1 %v1009_v14 }
  0x24   :  { %899 = vmatpush3.bf16.msra.mxu0 %v1015_v20  ;;  %v767_v20 = vld [vmem:[%s1337_s4] ss:$0 sm:$0xff] }
  0x25   :  { %900 = vmatprep.subr.bf16.mxu0 %v1016_v21 }
  0x26   :  { %871 = vmatpush3.bf16.msra.mxu1 %v1009_v14 }
  0x27   :  { %853 = vmatmul.mubr.msk.bf16.gmra.mrb[4].mxu0 %vm129_vm0, %v1001_v8  ;;  %872 = vmatprep.subr.bf16.mxu1 %v1010_v15 }
  0x28   :  { %856 = vmatprep.mubr.msk.bf16.mxu0 %vm129_vm0, %v1002_v10  ;;  %901 = vmatpush3.bf16.msra.mxu0 %v1016_v21 }
  0x29   :  { %902 = vmatprep.subr.bf16.mxu0 %v1017_v22 }
  0x2a   :  { %873 = vmatpush3.bf16.msra.mxu1 %v1010_v15 }
  0x2b   :  { %874 = vmatprep.subr.bf16.mxu1 %v1011_v16 }
  0x2c   :  { %903 = vmatpush3.bf16.msra.mxu0 %v1017_v22 }
  0x2e   :  { %875 = vmatpush3.bf16.msra.mxu1 %v1011_v16  ;;  %v1018_v16 = vld [vmem:[#allocation3 + $0x20] sm:$0xff]  }
  0x2f   :  { %857 = vmatmul.mubr.msk.bf16.gmra.mrb[8].mxu0 %vm129_vm0, %v1003_v11  ;;  %876 = vmatprep.subr.bf16.mxu1 %v1012_v17 }
  0x30   :  { %860 = vmatprep.mubr.msk.bf16.mxu0 %vm129_vm0, %v1004_v12  ;;  %904 = vmatprep.subr.bf16.mxu0 %v1018_v16 }
  0x31   :  { %905 = vmatpush3.bf16.msra.mxu0 %v1018_v16  ;;  %v1172_v16 = vmov 0  }
  0x32   :  { %877 = vmatpush3.bf16.msra.mxu1 %v1012_v17  ;;  %v1019_v17 = vld [vmem:[#allocation3 + $0x28] sm:$0xff]   ;;  %995 = vset.pattern.permute.xlu0 %v1172_v16 }
  0x33   :  { %878 = vmatprep.subr.bf16.mxu1 %v1013_v18  ;;  %906 = vmatprep.subr.bf16.mxu0 %v1019_v17 }
  0x35   :  { %907 = vmatpush3.bf16.msra.mxu0 %v1019_v17  ;;  %v776_v17 = vld [vmem:[%s1339_s6] ss:$0 sm:$0xff] }
  0x36   :  { %879 = vmatpush3.bf16.msra.mxu1 %v1013_v18  ;;  %v1020_v18 = vld [vmem:[#allocation3 + $0x30] sm:$0xff]  }
  0x37   :  { %861 = vmatmul.mubr.msk.bf16.gmra.mrb[12].mxu0 %vm129_vm0, %v1005_v13  ;;  %908 = vmatprep.subr.bf16.mxu0 %v1020_v18 }
  0x39   :  { %909 = vmatpush3.bf16.msra.mxu0 %v1020_v18 }
  0x3a   :  { %910 = vmatprep.subr.bf16.mxu0 %v1021_v19 }
  0x3d   :  { %911 = vmatpush3.bf16.msra.mxu0 %v1021_v19 }
  0xf2   :  { %v850_v24 = vpop.f32.mrb[0].mxu0 }
  0xf3   :  { %v197_v25 = vadd.f32 %v850_v24, %v748_v23  ;;  %v188_v26 = vpop.f32.mrb[1].mxu0 }
  0xf4   :  { %v189_v27 = vadd.f32 %v748_v23, %v188_v26  ;;  %v851_v28 = vpop.f32.mrb[2].mxu0 }
  0xf5   :  { %1022 = vtanh.f32 %v197_v25  ;;  %v200_v29 = vadd.f32 %v851_v28, %v748_v23  ;;  %v191_v30 = vpop.f32.mrb[3].mxu0 }
  0xf6   :  { %1024 = vtanh.f32 %v189_v27  ;;  %v192_v31 = vadd.f32 %v748_v23, %v191_v30 }
  0xf7   :  { %1026 = vtanh.f32 %v200_v29 }
  0xf8   :  { %1028 = vtanh.f32 %v192_v31 }
  0xfa   :  { %v854_v32 = vpop.f32.mrb[4].mxu0 }
  0xfb   :  { %v213_v33 = vadd.f32 %v854_v32, %v748_v23  ;;  %v204_v34 = vpop.f32.mrb[5].mxu0 }
  0xfc   :  { %v205_v35 = vadd.f32 %v748_v23, %v204_v34  ;;  %v855_v36 = vpop.f32.mrb[6].mxu0 }
  0xfd   :  { %1030 = vtanh.f32 %v213_v33  ;;  %v216_v37 = vadd.f32 %v855_v36, %v748_v23  ;;  %v207_v38 = vpop.f32.mrb[7].mxu0 }
  0xfe   :  { %1032 = vtanh.f32 %v205_v35  ;;  %v208_v39 = vadd.f32 %v748_v23, %v207_v38 }
  0xff   :  { %v1023_v40 = vpop.eup %1022  ;;  %1034 = vtanh.f32 %v216_v37 }
 0x100   :  { %v1025_v41 = vpop.eup %1024  ;;  %1036 = vtanh.f32 %v208_v39 }
 0x101   :  { %v1027_v42 = vpop.eup %1026 }
 0x102   :  { %v1029_v43 = vpop.eup %1028  ;;  %v268_v44 = vpack.c.bf16 %v1027_v42, %v1023_v40  ;;  %v858_v45 = vpop.f32.mrb[8].mxu0 }
 0x103   :  { %v267_v46 = vpack.c.bf16 %v1029_v43, %v1025_v41  ;;  %v229_v47 = vadd.f32 %v858_v45, %v748_v23  ;;  %v220_v48 = vpop.f32.mrb[9].mxu0 }
 0x104   :  { %v221_v49 = vadd.f32 %v748_v23, %v220_v48  ;;  %v859_v50 = vpop.f32.mrb[10].mxu0 }
 0x105   :  { %880 = vmatprep.mubr.bf16.mxu1 %v267_v46  ;;  %1038 = vtanh.f32 %v229_v47  ;;  %v232_v51 = vadd.f32 %v859_v50, %v748_v23  ;;  %v223_v52 = vpop.f32.mrb[11].mxu0 }
 0x106   :  { %881 = vmatmul.mubr.bf16.vlgmr.msra.gmra.mrb[0].mxu1 %v268_v44  ;;  %1040 = vtanh.f32 %v221_v49  ;;  %v224_v53 = vadd.f32 %v748_v23, %v223_v52 }
 0x107   :  { %v1031_v54 = vpop.eup %1030  ;;  %1042 = vtanh.f32 %v232_v51 }
 0x108   :  { %v1033_v55 = vpop.eup %1032  ;;  %1044 = vtanh.f32 %v224_v53 }
 0x109   :  { %v1035_v56 = vpop.eup %1034 }
 0x10a   :  { %v1037_v57 = vpop.eup %1036  ;;  %v270_v58 = vpack.c.bf16 %v1035_v56, %v1031_v54  ;;  %v862_v59 = vpop.f32.mrb[12].mxu0 }
 0x10b   :  { %v269_v60 = vpack.c.bf16 %v1037_v57, %v1033_v55  ;;  %v245_v61 = vadd.f32 %v862_v59, %v748_v23  ;;  %v236_v62 = vpop.f32.mrb[13].mxu0 }
 0x10c   :  { %v237_v63 = vadd.f32 %v748_v23, %v236_v62  ;;  %v863_v0 = vpop.f32.mrb[14].mxu0 }
 0x10d   :  { %884 = vmatprep.mubr.bf16.mxu1 %v269_v60  ;;  %1046 = vtanh.f32 %v245_v61  ;;  %v248_v1 = vadd.f32 %v863_v0, %v748_v23  ;;  %v239_v2 = vpop.f32.mrb[15].mxu0 }
 0x10e   :  { %885 = vmatmul.mubr.bf16.gmra.mrb[4].mxu1 %v270_v58  ;;  %1048 = vtanh.f32 %v237_v63  ;;  %v240_v3 = vadd.f32 %v748_v23, %v239_v2 }
 0x10f   :  { %v1039_v4 = vpop.eup %1038  ;;  %1050 = vtanh.f32 %v248_v1 }
 0x110   :  { %v1041_v5 = vpop.eup %1040  ;;  %1052 = vtanh.f32 %v240_v3 }
 0x111   :  { %v1043_v6 = vpop.eup %1042 }
 0x112   :  { %v1045_v7 = vpop.eup %1044  ;;  %v272_v8 = vpack.c.bf16 %v1043_v6, %v1039_v4 }
 0x113   :  { %v271_v9 = vpack.c.bf16 %v1045_v7, %v1041_v5 }
 0x115   :  { %888 = vmatprep.mubr.bf16.mxu1 %v271_v9 }
 0x116   :  { %889 = vmatmul.mubr.bf16.gmra.mrb[8].mxu1 %v272_v8 }
 0x117   :  { %v1047_v10 = vpop.eup %1046 }
 0x118   :  { %v1049_v11 = vpop.eup %1048 }
 0x119   :  { %v1051_v12 = vpop.eup %1050 }
 0x11a   :  { %v1053_v13 = vpop.eup %1052  ;;  %v274_v14 = vpack.c.bf16 %v1051_v12, %v1047_v10 }
 0x11b   :  { %v273_v15 = vpack.c.bf16 %v1053_v13, %v1049_v11  ;;  %v1169_v13 = vmov 0.0|0.0  }
 0x11c   :  { %963 = vmatprep.subr.bf16.mxu1 %v1169_v13 }
 0x11d   :  { %892 = vmatprep.mubr.bf16.mxu1 %v273_v15  ;;  %v652_v15 = vld [vmem:[#allocation2] sm:$0x1] }
 0x11e   :  { %893 = vmatmul.mubr.bf16.gmra.mrb[12].mxu1 %v274_v14  ;;  %v1171_v14 = vmov 0.0   ;;  %655 = vperm.xlu0 %995, %v652_v15  }
 0x11f   :  { %960 = vmatprep.mubr.msk.f32.mxu1 %vm1170_vm1, %v1171_v14 }
 0x19d   :  { %v656_v15 = vpop.permute.xlu0 %655 }
 0x1d9   :  { %v882_v21 = vpop.f32.mrb[0].mxu1 }
 0x1da   :  { %v389_v22 = vadd.f32 %v882_v21, %v767_v20  ;;  %v380_v23 = vpop.f32.mrb[1].mxu1 }
 0x1db   :  { %v381_v24 = vadd.f32 %v767_v20, %v380_v23  ;;  %v883_v25 = vpop.f32.mrb[2].mxu1 }
 0x1dc   :  { %1054 = vtanh.f32 %v389_v22  ;;  %v392_v26 = vadd.f32 %v883_v25, %v767_v20  ;;  %v383_v27 = vpop.f32.mrb[3].mxu1 }
 0x1dd   :  { %1056 = vtanh.f32 %v381_v24  ;;  %v384_v28 = vadd.f32 %v767_v20, %v383_v27 }
 0x1de   :  { %1058 = vtanh.f32 %v392_v26 }
 0x1df   :  { %1060 = vtanh.f32 %v384_v28 }
 0x1e1   :  { %v886_v29 = vpop.f32.mrb[4].mxu1 }
 0x1e2   :  { %v405_v30 = vadd.f32 %v886_v29, %v767_v20  ;;  %v396_v31 = vpop.f32.mrb[5].mxu1 }
 0x1e3   :  { %v397_v32 = vadd.f32 %v767_v20, %v396_v31  ;;  %v887_v33 = vpop.f32.mrb[6].mxu1 }
 0x1e4   :  { %1062 = vtanh.f32 %v405_v30  ;;  %v408_v34 = vadd.f32 %v887_v33, %v767_v20  ;;  %v399_v35 = vpop.f32.mrb[7].mxu1 }
 0x1e5   :  { %1064 = vtanh.f32 %v397_v32  ;;  %v400_v36 = vadd.f32 %v767_v20, %v399_v35 }
 0x1e6   :  { %v1055_v37 = vpop.eup %1054  ;;  %1066 = vtanh.f32 %v408_v34 }
 0x1e7   :  { %v1057_v38 = vpop.eup %1056  ;;  %1068 = vtanh.f32 %v400_v36 }
 0x1e8   :  { %v1059_v39 = vpop.eup %1058 }
 0x1e9   :  { %v1061_v40 = vpop.eup %1060  ;;  %v460_v41 = vpack.c.bf16 %v1059_v39, %v1055_v37  ;;  %v890_v42 = vpop.f32.mrb[8].mxu1 }
 0x1ea   :  { %v459_v43 = vpack.c.bf16 %v1061_v40, %v1057_v38  ;;  %v421_v44 = vadd.f32 %v890_v42, %v767_v20  ;;  %v412_v45 = vpop.f32.mrb[9].mxu1 }
 0x1eb   :  { %v413_v46 = vadd.f32 %v767_v20, %v412_v45  ;;  %v891_v47 = vpop.f32.mrb[10].mxu1 }
 0x1ec   :  { %912 = vmatprep.mubr.bf16.mxu0 %v459_v43  ;;  %1070 = vtanh.f32 %v421_v44  ;;  %v424_v48 = vadd.f32 %v891_v47, %v767_v20  ;;  %v415_v49 = vpop.f32.mrb[11].mxu1 }
 0x1ed   :  { %913 = vmatmul.mubr.bf16.vlgmr.msra.gmra.mrb[16].mxu0 %v460_v41  ;;  %1072 = vtanh.f32 %v413_v46  ;;  %v416_v50 = vadd.f32 %v767_v20, %v415_v49 }
 0x1ee   :  { %v1063_v51 = vpop.eup %1062  ;;  %1074 = vtanh.f32 %v424_v48 }
 0x1ef   :  { %v1065_v52 = vpop.eup %1064  ;;  %1076 = vtanh.f32 %v416_v50 }
 0x1f0   :  { %v1067_v53 = vpop.eup %1066 }
 0x1f1   :  { %v1069_v54 = vpop.eup %1068  ;;  %v462_v55 = vpack.c.bf16 %v1067_v53, %v1063_v51  ;;  %v894_v56 = vpop.f32.mrb[12].mxu1 }
 0x1f2   :  { %v461_v57 = vpack.c.bf16 %v1069_v54, %v1065_v52  ;;  %v437_v58 = vadd.f32 %v894_v56, %v767_v20  ;;  %v428_v59 = vpop.f32.mrb[13].mxu1 }
 0x1f3   :  { %v429_v60 = vadd.f32 %v767_v20, %v428_v59  ;;  %v895_v61 = vpop.f32.mrb[14].mxu1 }
 0x1f4   :  { %916 = vmatprep.mubr.bf16.mxu0 %v461_v57  ;;  %1078 = vtanh.f32 %v437_v58  ;;  %v440_v62 = vadd.f32 %v895_v61, %v767_v20  ;;  %v431_v63 = vpop.f32.mrb[15].mxu1 }
 0x1f5   :  { %917 = vmatmul.mubr.bf16.gmra.mrb[20].mxu0 %v462_v55  ;;  %1080 = vtanh.f32 %v429_v60  ;;  %v432_v0 = vadd.f32 %v767_v20, %v431_v63 }
 0x1f6   :  { %v1071_v1 = vpop.eup %1070  ;;  %1082 = vtanh.f32 %v440_v62 }
 0x1f7   :  { %v1073_v2 = vpop.eup %1072  ;;  %1084 = vtanh.f32 %v432_v0 }
 0x1f8   :  { %v1075_v3 = vpop.eup %1074 }
 0x1f9   :  { %v1077_v4 = vpop.eup %1076  ;;  %v464_v5 = vpack.c.bf16 %v1075_v3, %v1071_v1 }
 0x1fa   :  { %v463_v6 = vpack.c.bf16 %v1077_v4, %v1073_v2 }
 0x1fc   :  { %920 = vmatprep.mubr.bf16.mxu0 %v463_v6 }
 0x1fd   :  { %921 = vmatmul.mubr.bf16.gmra.mrb[24].mxu0 %v464_v5 }
 0x1fe   :  { %v1079_v7 = vpop.eup %1078 }
 0x1ff   :  { %v1081_v8 = vpop.eup %1080 }
 0x200   :  { %v1083_v9 = vpop.eup %1082 }
 0x201   :  { %v1085_v10 = vpop.eup %1084  ;;  %v466_v11 = vpack.c.bf16 %v1083_v9, %v1079_v7 }
 0x202   :  { %v465_v12 = vpack.c.bf16 %v1085_v10, %v1081_v8  ;;  %v651_v10 = vld [vmem:[%s1340_s7] sm:$0x1] }
 0x204   :  { %924 = vmatprep.mubr.bf16.mxu0 %v465_v12 }
 0x205   :  { %925 = vmatmul.mubr.bf16.gmra.mrb[28].mxu0 %v466_v11  ;;  %v658_v11 = vlaneseq }
 0x207   :  { %v659_v12 = vshrl.u32 %v658_v11, 7 }
 0x209   :  { %v660_v14 = vsub.s32 0, %v659_v12 }
 0x20b   :  { %v661_v16 = vrot.slane %v656_v15, %v660_v14 }
 0x2c0   :  { %v914_v18 = vpop.f32.mrb[16].mxu0 }
 0x2c1   :  { %v581_v19 = vadd.f32 %v914_v18, %v776_v17  ;;  %v572_v20 = vpop.f32.mrb[17].mxu0 }
 0x2c2   :  { %v573_v21 = vadd.f32 %v776_v17, %v572_v20  ;;  %v915_v22 = vpop.f32.mrb[18].mxu0 }
 0x2c3   :  { %1086 = vtanh.f32 %v581_v19  ;;  %v584_v23 = vadd.f32 %v915_v22, %v776_v17  ;;  %v575_v24 = vpop.f32.mrb[19].mxu0 }
 0x2c4   :  { %1088 = vtanh.f32 %v573_v21  ;;  %v576_v25 = vadd.f32 %v776_v17, %v575_v24 }
 0x2c5   :  { %1090 = vtanh.f32 %v584_v23 }
 0x2c6   :  { %1092 = vtanh.f32 %v576_v25 }
 0x2c8   :  { %v918_v26 = vpop.f32.mrb[20].mxu0 }
 0x2c9   :  { %v597_v27 = vadd.f32 %v918_v26, %v776_v17  ;;  %v588_v28 = vpop.f32.mrb[21].mxu0 }
 0x2ca   :  { %v589_v29 = vadd.f32 %v776_v17, %v588_v28  ;;  %v919_v30 = vpop.f32.mrb[22].mxu0 }
 0x2cb   :  { %1094 = vtanh.f32 %v597_v27  ;;  %v600_v31 = vadd.f32 %v919_v30, %v776_v17  ;;  %v591_v32 = vpop.f32.mrb[23].mxu0 }
 0x2cc   :  { %1096 = vtanh.f32 %v589_v29  ;;  %v592_v33 = vadd.f32 %v776_v17, %v591_v32 }
 0x2cd   :  { %v1087_v34 = vpop.eup %1086  ;;  %1098 = vtanh.f32 %v600_v31 }
 0x2ce   :  { %v1089_v35 = vpop.eup %1088  ;;  %1100 = vtanh.f32 %v592_v33 }
 0x2cf   :  { %v1091_v36 = vpop.eup %1090 }
 0x2d0   :  { %v1093_v37 = vpop.eup %1092  ;;  %v922_v38 = vpop.f32.mrb[24].mxu0  ;;  %v967_v39 = vpack.c.bf16 %v1091_v36, %v1087_v34 }
 0x2d1   :  { %v964_v40 = vpack.c.bf16 %v1093_v37, %v1089_v35  ;;  %v613_v41 = vadd.f32 %v922_v38, %v776_v17  ;;  %v604_v42 = vpop.f32.mrb[25].mxu0 }
 0x2d2   :  { %v605_v43 = vadd.f32 %v776_v17, %v604_v42  ;;  %v923_v44 = vpop.f32.mrb[26].mxu0 }
 0x2d3   :  { %965 = vmatpush3.bf16.xpose.msra.mxu1 %v964_v40  ;;  %1102 = vtanh.f32 %v613_v41  ;;  %v616_v45 = vadd.f32 %v923_v44, %v776_v17  ;;  %v607_v46 = vpop.f32.mrb[27].mxu0 }
 0x2d4   :  { %1104 = vtanh.f32 %v605_v43  ;;  %v608_v47 = vadd.f32 %v776_v17, %v607_v46  ;;  %966 = vmatprep.subr.bf16.mxu1 %v1169_v13 }
 0x2d5   :  { %v1095_v48 = vpop.eup %1094  ;;  %1106 = vtanh.f32 %v616_v45 }
 0x2d6   :  { %v1097_v49 = vpop.eup %1096  ;;  %1108 = vtanh.f32 %v608_v47 }
 0x2d7   :  { %v1099_v50 = vpop.eup %1098 }
 0x2d8   :  { %v1101_v51 = vpop.eup %1100  ;;  %v926_v52 = vpop.f32.mrb[28].mxu0  ;;  %v973_v53 = vpack.c.bf16 %v1099_v50, %v1095_v48 }
 0x2d9   :  { %v970_v54 = vpack.c.bf16 %v1101_v51, %v1097_v49  ;;  %v629_v55 = vadd.f32 %v926_v52, %v776_v17  ;;  %v620_v56 = vpop.f32.mrb[29].mxu0 }
 0x2da   :  { %v621_v57 = vadd.f32 %v776_v17, %v620_v56  ;;  %v927_v58 = vpop.f32.mrb[30].mxu0 }
 0x2db   :  { %968 = vmatpush3.bf16.xpose.msra.mxu1 %v967_v39  ;;  %1110 = vtanh.f32 %v629_v55  ;;  %v632_v59 = vadd.f32 %v927_v58, %v776_v17  ;;  %v623_v60 = vpop.f32.mrb[31].mxu0 }
 0x2dc   :  { %969 = vmatprep.subr.bf16.mxu1 %v1169_v13  ;;  %1112 = vtanh.f32 %v621_v57  ;;  %v624_v61 = vadd.f32 %v776_v17, %v623_v60 }
 0x2dd   :  { %v1103_v62 = vpop.eup %1102  ;;  %1114 = vtanh.f32 %v632_v59 }
 0x2de   :  { %v1105_v63 = vpop.eup %1104  ;;  %1116 = vtanh.f32 %v624_v61 }
 0x2df   :  { %v1107_v0 = vpop.eup %1106 }
 0x2e0   :  { %v1109_v1 = vpop.eup %1108  ;;  %v979_v2 = vpack.c.bf16 %v1107_v0, %v1103_v62 }
 0x2e1   :  { %v976_v3 = vpack.c.bf16 %v1109_v1, %v1105_v63 }
 0x2e3   :  { %971 = vmatpush3.bf16.xpose.msra.mxu1 %v970_v54 }
 0x2e4   :  { %972 = vmatprep.subr.bf16.mxu1 %v1169_v13 }
 0x2e5   :  { %v1111_v4 = vpop.eup %1110 }
 0x2e6   :  { %v1113_v5 = vpop.eup %1112 }
 0x2e7   :  { %v1115_v6 = vpop.eup %1114 }
 0x2e8   :  { %v1117_v7 = vpop.eup %1116  ;;  %v985_v8 = vpack.c.bf16 %v1115_v6, %v1111_v4 }
 0x2e9   :  { %v982_v9 = vpack.c.bf16 %v1117_v7, %v1113_v5 }
 0x2eb   :  { %974 = vmatpush3.bf16.xpose.msra.mxu1 %v973_v53 }
 0x2ec   :  { %975 = vmatprep.subr.bf16.mxu1 %v1169_v13 }
 0x2f3   :  { %977 = vmatpush3.bf16.xpose.msra.mxu1 %v976_v3 }
 0x2f4   :  { %978 = vmatprep.subr.bf16.mxu1 %v1169_v13 }
 0x2fb   :  { %980 = vmatpush3.bf16.xpose.msra.mxu1 %v979_v2 }
 0x2fc   :  { %981 = vmatprep.subr.bf16.mxu1 %v1169_v13 }
 0x303   :  { %983 = vmatpush3.bf16.xpose.msra.mxu1 %v982_v9 }
 0x304   :  { %984 = vmatprep.subr.bf16.mxu1 %v1169_v13 }
 0x30b   :  { %986 = vmatpush3.bf16.xpose.msra.mxu1 %v985_v8 }
 0x312   :  { %961 = vmatmul.mubr.f32.vlgmr.msra.gmra.mrb[16].mxu1 %v651_v10 }
 0x3e5   :  { %v728_v17 = vpop.f32.mrb[16].mxu1 }
 0x3e6   :  { %v729_v18 = vadd.f32 %v728_v17, %v661_v16  ;;  %v962_v19 = vpop.f32.mrb[17].mxu1 }
 0x3e8   :  { %732 = vst [vmem:[#allocation6] sm:$0x1] %v729_v18 }
 0x3e9   :  { %1151 = shalt.err (!%p1148_p12)
}
 0x3ea   :  { %s1152_s20 = scalar_lea.hbm %s1342_s9, 16 }
 0x3eb   :  { %p1153_p13 = scmp.ne.s32.totalorder %s1342_s9, %s1152_s20  ;;  %p1156_p0 = scmp.lt.u32.totalorder %s1152_s20, %s1342_s9 }
 0x3ed   :  { %p1158_p1 = pnand %p1156_p0, %p1153_p13 }
 0x3ef   :  { %1161 = shalt.err (!%p1158_p1)
}
 0x3f0   :  { %742 = dma.vmem_to_hbm [thread:$0]  %s740_s17, 16, %s1342_s9, [#allocation5]  }
 0x3f1   :  { %1164 = dma.done.wait [#allocation5], 16  }
 0x3f2   :  { %1165 = vsyncadd [#allocation5], 4294967280 }
 0x3f3   :  { %746 = vsyncpa [#allocation4], 1 }
 0x3f4   :  { %747 = vsyncpa [#allocation5], 1 }

</bundles_post_ra>
